<compile_context>
chip_gen: v6e
topology: v6e:2x2x1
jax: 0.10.0
libtpu: 0.0.40
codegen_flags: <defaults>
</compile_context>

<pallas_src>
import functools

import jax
import jax.numpy as jnp
from jax.experimental import pallas as pl
from jax.experimental.pallas import tpu as pltpu


# ----------------------------------------------------------------------------
# Fused kernel: diffusion chain -> VMEM slab -> one long-K MLP matmul + bias
# ----------------------------------------------------------------------------
def _make_fused_kernel(nb, n_support, order, V, CL):
    S = n_support

    def kernel(*refs):
        x_ref = refs[0]                  # (nb, V, C*L)
        a_refs = refs[1:1 + S]           # S x (nb, V, V)
        wk_ref = refs[1 + S]             # ((P+1)*C*L, c_out*L)   resident
        b_ref = refs[2 + S]              # (1, c_out*L)           resident
        o_ref = refs[3 + S]              # (nb*V, c_out*L)
        h_ref = refs[4 + S]              # (nb*V, (P+1)*C*L) VMEM scratch slab

        for i in range(nb):                                   # static unroll
            x0 = x_ref[i]                                     # (V, C*L)
            r0 = i * V
            h_ref[r0:r0 + V, 0:CL] = x0                       # p = 0 block (x itself)
            for s in range(S):                                # static unroll
                a_s = a_refs[s][i]                            # (V, V)
                xk = x0
                for k in range(order):                        # static unroll
                    # diffusion tap: xk[w, c*L+l] = sum_v A[w, v] * xk_prev[v, c*L+l]
                    # f32 MXU accumulate, recast to the activation dtype between taps
                    # (bf16-native chaining on v5e, matches torch chain precision).
                    xk = jnp.dot(a_s, xk,
                                 preferred_element_type=jnp.float32).astype(x0.dtype)
                    off = (1 + s * order + k) * CL
                    h_ref[r0:r0 + V, off:off + CL] = xk

        # Single long-K MLP matmul: one MXU stream instead of P+1 small dots and
        # P full-tile f32 VPU adds; accumulates in f32, written to HBM exactly once.
        y = jnp.dot(h_ref[...], wk_ref[...], preferred_element_type=jnp.float32)
        o_ref[...] = (y + b_ref[...].astype(jnp.float32)).astype(o_ref.dtype)

    return kernel


def _choose_nb(N, V, CL, S, K, Mo, itemsize, row_target=256, vmem_budget=24 << 20):
    """Largest divisor of N whose per-step blocks (double-buffered) + resident weight
    + slab stay under a conservative VMEM budget, stopping once nb*V rows are big
    enough to fill MXU rows / amortize per-grid-step overhead."""
    nb = 1
    for cand in range(1, N + 1):
        if N % cand:
            continue
        streamed = 2 * cand * (V * CL + S * V * V + V * Mo) * itemsize
        resident = 2 * (K * Mo + Mo) * itemsize
        slab = cand * V * K * itemsize
        if (streamed + resident + slab > vmem_budget) and cand > 1:
            break
        nb = cand
        if cand * V >= row_target:
            break
    return nb


def fused_gcn(x_flat, supports, wk, b_kron, order):
    """x_flat: (N, V, C*L); supports: tuple of S arrays (N, V, V);
    wk: ((P+1)*C*L, c_out*L); b_kron: (1, c_out*L)  ->  (N*V, c_out*L)."""
    N, V, CL = x_flat.shape
    S = len(supports)
    K, Mo = wk.shape
    assert K == (S * order + 1) * CL, (K, S, order, CL)

    itemsize = x_flat.dtype.itemsize
    nb = _choose_nb(N, V, CL, S, K, Mo, itemsize)
    grid = (N // nb,)

    kernel = _make_fused_kernel(nb, S, order, V, CL)

    streamed = 2 * nb * (V * CL + S * V * V + V * Mo) * itemsize
    resident = 2 * (K * Mo + Mo) * wk.dtype.itemsize
    slab = nb * V * K * itemsize
    vmem_limit = int(min(64 << 20, max(32 << 20, 2 * (streamed + resident + slab))))

    flops = 2 * N * (S * order * V * V * CL) + 2 * N * V * K * Mo
    bytes_accessed = int(
        x_flat.size * itemsize
        + sum(a.size * a.dtype.itemsize for a in supports)
        + wk.size * wk.dtype.itemsize
        + b_kron.size * b_kron.dtype.itemsize
        + N * V * Mo * itemsize)

    in_specs = (
        [pl.BlockSpec((nb, V, CL), lambda g: (g, 0, 0))]
        + [pl.BlockSpec((nb, V, V), lambda g: (g, 0, 0)) for _ in range(S)]
        + [
            # Resident weight / bias: constant index_map -> stays in VMEM across steps.
            # TODO(synk): pipeline_mode=pl.Buffered(1) would drop the redundant second
            # buffer for these at large L (matters for v7x's 64 MiB VMEM).
            pl.BlockSpec((K, Mo), lambda g: (0, 0)),
            pl.BlockSpec((1, Mo), lambda g: (0, 0)),
        ]
    )

    return pl.pallas_call(
        kernel,
        out_shape=jax.ShapeDtypeStruct((N * V, Mo), x_flat.dtype),
        grid=grid,
        in_specs=in_specs,
        out_specs=pl.BlockSpec((nb * V, Mo), lambda g: (g, 0)),
        scratch_shapes=[pltpu.VMEM((nb * V, K), x_flat.dtype)],
        compiler_params=pltpu.CompilerParams(
            dimension_semantics=("parallel",),
            vmem_limit_bytes=vmem_limit,
            # Allow XLA to fuse the x relayout / support producers into the prologue
            # instead of materializing an extra HBM pass before a mem-bound kernel.
            allow_input_fusion=[True] * (1 + S) + [False, False],
        ),
        cost_estimate=pl.CostEstimate(
            flops=flops, transcendentals=0, bytes_accessed=bytes_accessed),
    )(x_flat, *supports, wk, b_kron)


# ----------------------------------------------------------------------------
# Parameter prep (hoisted out of the per-call forward; run once per weight update)
# ----------------------------------------------------------------------------
def prepare_mlp_params(weight, bias, c_in, seq_len, support_len, order):
    """Builds the kron-expanded 1x1-conv weight once.

    In the [v, c*L+l] lane layout the channel contraction of the 1x1 conv is a plain
    2-D matmul against kron(W_p^T, I_L).  NOTE: this inflates MLP MXU FLOPs by L and
    resident weight bytes by L^2 — fine for small/medium L where the kernel stays
    HBM-bound, but for large L (c_out*L >> V, or wk approaching the scoped VMEM
    limit, especially v7x) a per-l tiled / un-expanded-W MLP should be used instead.
    TODO(synk): Mo-tiled, un-expanded-W MLP path for large L.
    """
    c_out = weight.shape[0]
    P = support_len * order
    L = seq_len
    w2 = weight.reshape(c_out, (P + 1) * c_in)                    # (c_out, (P+1)*C)
    w_pco = w2.reshape(c_out, P + 1, c_in).transpose(1, 2, 0)     # (P+1, C, c_out)
    eye_l = jnp.eye(L, dtype=w2.dtype)
    wk = jnp.einsum('pco,lm->pclom', w_pco, eye_l)
    wk = wk.reshape((P + 1) * c_in * L, c_out * L)                # ((P+1)*C*L, c_out*L)
    b_kron = jnp.repeat(bias, L).reshape(1, c_out * L)            # bias[o] at lane o*L+m
    return wk, b_kron


# ----------------------------------------------------------------------------
# Full forward pass (thin layout glue in JAX, all math inside the fused kernel)
# ----------------------------------------------------------------------------
@functools.partial(jax.jit, static_argnames=("order",))
def batch_a_gcn_forward(x, supports, wk, b_kron, order=2):
    """x: (N, C, V, L); supports: tuple of (N, V, V);
    wk/b_kron from prepare_mlp_params.  Returns (N, c_out, V, L)."""
    N, C, V, L = x.shape
    # channels-inside-lanes flatten: x_flat[n, v, c*L + l] = x[n, c, v, l].
    # In a full model the activations would be kept in this layout end-to-end;
    # allow_input_fusion lets XLA pull this relayout into the kernel prologue.
    x_flat = jnp.transpose(x, (0, 2, 1, 3)).reshape(N, V, C * L)
    wk = wk.astype(x_flat.dtype)

    y_flat = fused_gcn(x_flat, supports, wk, b_kron, order)       # (N*V, c_out*L)
    c_out = b_kron.shape[-1] // L
    y = y_flat.reshape(N, V, c_out, L).transpose(0, 2, 1, 3)      # (N, c_out, V, L)
    # Dropout: eval-mode identity.
    # TODO(synk): training-mode dropout would use pltpu.prng_seed / prng_random_bits.
    return y


# ----------------------------------------------------------------------------
# Pure-JAX reference (mirrors the torch forward) for a correctness check
# ----------------------------------------------------------------------------
def reference(x, supports, weight, bias, order=2):
    out = [x]
    for a in supports:
        x1 = jnp.einsum('ncvl,nwv->ncwl', x, a)
        out.append(x1)
        for _ in range(2, order + 1):
            x2 = jnp.einsum('ncvl,nwv->ncwl', x1, a)
            out.append(x2)
            x1 = x2
    h = jnp.concatenate(out, axis=1)
    w2 = weight.reshape(weight.shape[0], -1)
    return jnp.einsum('oc,ncvl->novl', w2, h) + bias[None, :, None, None]


if __name__ == "__main__":
    key = jax.random.PRNGKey(0)
    N, C, V, L = 2, 4, 16, 8          # batch, c_in, nodes, seq
    S, order, c_out = 3, 2, 8         # support_len, order, output channels
    c_in_total = (order * S + 1) * C  # 28

    ks = jax.random.split(key, 3 + S)
    x = jax.random.normal(ks[0], (N, C, V, L), jnp.float32)
    supports = tuple(
        jax.random.normal(ks[1 + i], (N, V, V), jnp.float32) * 0.1 for i in range(S)
    )
    weight = jax.random.normal(ks[-2], (c_out, c_in_total, 1, 1), jnp.float32) * 0.1
    bias = jax.random.normal(ks[-1], (c_out,), jnp.float32) * 0.1

    # Hoisted once-per-weight-update parameter prep (not inside the jitted forward).
    wk, b_kron = prepare_mlp_params(weight, bias, C, L, S, order)

    y = batch_a_gcn_forward(x, supports, wk, b_kron, order=order)
    y = jax.block_until_ready(y)

    y_ref = reference(x, supports, weight, bias, order=order)
    max_err = float(jnp.max(jnp.abs(y - y_ref)))
    assert y.shape == (N, c_out, V, L), y.shape
    assert jnp.allclose(y, y_ref, atol=1e-4, rtol=1e-4), max_err
    print("KERNEL_OK")
</pallas_src>

<mosaic_0001>
module attributes {stable_mosaic.version = 11 : i64} {
  func.func @kernel(%arg0: i32, %arg1: memref<2x16x32xf32, #tpu.memory_space<vmem>>, %arg2: memref<2x16x16xf32, #tpu.memory_space<vmem>>, %arg3: memref<2x16x16xf32, #tpu.memory_space<vmem>>, %arg4: memref<2x16x16xf32, #tpu.memory_space<vmem>>, %arg5: memref<224x64xf32, #tpu.memory_space<vmem>>, %arg6: memref<1x64xf32, #tpu.memory_space<vmem>>, %arg7: memref<32x64xf32, #tpu.memory_space<vmem>>, %arg8: memref<32x224xf32, #tpu.memory_space<vmem>>) attributes {dimension_semantics = [#tpu.dimension_semantics<parallel>], iteration_bounds = array<i64: 1>, scalar_prefetch = 0 : i64, scratch_operands = 1 : i64, tpu.core_type = #tpu.core_type<tc>, window_params = [{transform_indices = @transform_0, window_bounds = array<i64: 2, 16, 32>}, {transform_indices = @transform_1, window_bounds = array<i64: 2, 16, 16>}, {transform_indices = @transform_2, window_bounds = array<i64: 2, 16, 16>}, {transform_indices = @transform_3, window_bounds = array<i64: 2, 16, 16>}, {pipeline_mode = #tpu.pipeline_mode<synchronous>, transform_indices = @transform_4, window_bounds = array<i64: 224, 64>}, {pipeline_mode = #tpu.pipeline_mode<synchronous>, transform_indices = @transform_5, window_bounds = array<i64: 1, 64>}, {transform_indices = @transform_6, window_bounds = array<i64: 32, 64>}]} {
    %c0 = arith.constant 0 : index
    %c0_0 = arith.constant 0 : index
    %c0_1 = arith.constant 0 : index
    %0 = vector.load %arg1[%c0, %c0_0, %c0_1] : memref<2x16x32xf32, #tpu.memory_space<vmem>>, vector<1x16x32xf32>
    %1 = vector.shape_cast %0 : vector<1x16x32xf32> to vector<16x32xf32>
    %c0_2 = arith.constant 0 : index
    %c0_3 = arith.constant 0 : index
    %2 = vector.load %arg8[%c0_2, %c0_3] : memref<32x224xf32, #tpu.memory_space<vmem>>, vector<16x32xf32>
    tpu.vector_store %arg8[%c0_2, %c0_3], %1 {strides = array<i32>} : memref<32x224xf32, #tpu.memory_space<vmem>>, vector<16x32xf32>,
    %c0_4 = arith.constant 0 : index
    %c0_5 = arith.constant 0 : index
    %c0_6 = arith.constant 0 : index
    %3 = vector.load %arg2[%c0_4, %c0_5, %c0_6] : memref<2x16x16xf32, #tpu.memory_space<vmem>>, vector<1x16x16xf32>
    %4 = vector.shape_cast %3 : vector<1x16x16xf32> to vector<16x16xf32>
    %cst = arith.constant dense<0.000000e+00> : vector<16x32xf32>
    %5 = tpu.matmul %4, %1, %cst {dimension_numbers = #tpu.dot_dimension_numbers<[1], [0], [0], [1], [0, 0, 1, 1], [], []>} : vector<16x16xf32>, vector<16x32xf32>, vector<16x32xf32> -> vector<16x32xf32>
    %c0_7 = arith.constant 0 : index
    %c32 = arith.constant 32 : index
    %6 = vector.load %arg8[%c0_7, %c32] : memref<32x224xf32, #tpu.memory_space<vmem>>, vector<16x32xf32>
    tpu.vector_store %arg8[%c0_7, %c32], %5 {strides = array<i32>} : memref<32x224xf32, #tpu.memory_space<vmem>>, vector<16x32xf32>,
    %cst_8 = arith.constant dense<0.000000e+00> : vector<16x32xf32>
    %7 = tpu.matmul %4, %5, %cst_8 {dimension_numbers = #tpu.dot_dimension_numbers<[1], [0], [0], [1], [0, 0, 1, 1], [], []>} : vector<16x16xf32>, vector<16x32xf32>, vector<16x32xf32> -> vector<16x32xf32>
    %c0_9 = arith.constant 0 : index
    %c64 = arith.constant 64 : index
    %8 = vector.load %arg8[%c0_9, %c64] : memref<32x224xf32, #tpu.memory_space<vmem>>, vector<16x32xf32>
    tpu.vector_store %arg8[%c0_9, %c64], %7 {strides = array<i32>} : memref<32x224xf32, #tpu.memory_space<vmem>>, vector<16x32xf32>,
    %c0_10 = arith.constant 0 : index
    %c0_11 = arith.constant 0 : index
    %c0_12 = arith.constant 0 : index
    %9 = vector.load %arg3[%c0_10, %c0_11, %c0_12] : memref<2x16x16xf32, #tpu.memory_space<vmem>>, vector<1x16x16xf32>
    %10 = vector.shape_cast %9 : vector<1x16x16xf32> to vector<16x16xf32>
    %cst_13 = arith.constant dense<0.000000e+00> : vector<16x32xf32>
    %11 = tpu.matmul %10, %1, %cst_13 {dimension_numbers = #tpu.dot_dimension_numbers<[1], [0], [0], [1], [0, 0, 1, 1], [], []>} : vector<16x16xf32>, vector<16x32xf32>, vector<16x32xf32> -> vector<16x32xf32>
    %c0_14 = arith.constant 0 : index
    %c96 = arith.constant 96 : index
    %12 = vector.load %arg8[%c0_14, %c96] : memref<32x224xf32, #tpu.memory_space<vmem>>, vector<16x32xf32>
    tpu.vector_store %arg8[%c0_14, %c96], %11 {strides = array<i32>} : memref<32x224xf32, #tpu.memory_space<vmem>>, vector<16x32xf32>,
    %cst_15 = arith.constant dense<0.000000e+00> : vector<16x32xf32>
    %13 = tpu.matmul %10, %11, %cst_15 {dimension_numbers = #tpu.dot_dimension_numbers<[1], [0], [0], [1], [0, 0, 1, 1], [], []>} : vector<16x16xf32>, vector<16x32xf32>, vector<16x32xf32> -> vector<16x32xf32>
    %c0_16 = arith.constant 0 : index
    %c128 = arith.constant 128 : index
    %14 = vector.load %arg8[%c0_16, %c128] : memref<32x224xf32, #tpu.memory_space<vmem>>, vector<16x32xf32>
    tpu.vector_store %arg8[%c0_16, %c128], %13 {strides = array<i32>} : memref<32x224xf32, #tpu.memory_space<vmem>>, vector<16x32xf32>,
    %c0_17 = arith.constant 0 : index
    %c0_18 = arith.constant 0 : index
    %c0_19 = arith.constant 0 : index
    %15 = vector.load %arg4[%c0_17, %c0_18, %c0_19] : memref<2x16x16xf32, #tpu.memory_space<vmem>>, vector<1x16x16xf32>
    %16 = vector.shape_cast %15 : vector<1x16x16xf32> to vector<16x16xf32>
    %cst_20 = arith.constant dense<0.000000e+00> : vector<16x32xf32>
    %17 = tpu.matmul %16, %1, %cst_20 {dimension_numbers = #tpu.dot_dimension_numbers<[1], [0], [0], [1], [0, 0, 1, 1], [], []>} : vector<16x16xf32>, vector<16x32xf32>, vector<16x32xf32> -> vector<16x32xf32>
    %c0_21 = arith.constant 0 : index
    %c160 = arith.constant 160 : index
    %18 = vector.load %arg8[%c0_21, %c160] : memref<32x224xf32, #tpu.memory_space<vmem>>, vector<16x32xf32>
    tpu.vector_store %arg8[%c0_21, %c160], %17 {strides = array<i32>} : memref<32x224xf32, #tpu.memory_space<vmem>>, vector<16x32xf32>,
    %cst_22 = arith.constant dense<0.000000e+00> : vector<16x32xf32>
    %19 = tpu.matmul %16, %17, %cst_22 {dimension_numbers = #tpu.dot_dimension_numbers<[1], [0], [0], [1], [0, 0, 1, 1], [], []>} : vector<16x16xf32>, vector<16x32xf32>, vector<16x32xf32> -> vector<16x32xf32>
    %c0_23 = arith.constant 0 : index
    %c192 = arith.constant 192 : index
    %20 = vector.load %arg8[%c0_23, %c192] : memref<32x224xf32, #tpu.memory_space<vmem>>, vector<16x32xf32>
    tpu.vector_store %arg8[%c0_23, %c192], %19 {strides = array<i32>} : memref<32x224xf32, #tpu.memory_space<vmem>>, vector<16x32xf32>,
    %c1 = arith.constant 1 : index
    %c0_24 = arith.constant 0 : index
    %c0_25 = arith.constant 0 : index
    %21 = vector.load %arg1[%c1, %c0_24, %c0_25] : memref<2x16x32xf32, #tpu.memory_space<vmem>>, vector<1x16x32xf32>
    %22 = vector.shape_cast %21 : vector<1x16x32xf32> to vector<16x32xf32>
    %c16 = arith.constant 16 : index
    %c0_26 = arith.constant 0 : index
    %23 = vector.load %arg8[%c16, %c0_26] : memref<32x224xf32, #tpu.memory_space<vmem>>, vector<16x32xf32>
    tpu.vector_store %arg8[%c16, %c0_26], %22 {strides = array<i32>} : memref<32x224xf32, #tpu.memory_space<vmem>>, vector<16x32xf32>,
    %c1_27 = arith.constant 1 : index
    %c0_28 = arith.constant 0 : index
    %c0_29 = arith.constant 0 : index
    %24 = vector.load %arg2[%c1_27, %c0_28, %c0_29] : memref<2x16x16xf32, #tpu.memory_space<vmem>>, vector<1x16x16xf32>
    %25 = vector.shape_cast %24 : vector<1x16x16xf32> to vector<16x16xf32>
    %cst_30 = arith.constant dense<0.000000e+00> : vector<16x32xf32>
    %26 = tpu.matmul %25, %22, %cst_30 {dimension_numbers = #tpu.dot_dimension_numbers<[1], [0], [0], [1], [0, 0, 1, 1], [], []>} : vector<16x16xf32>, vector<16x32xf32>, vector<16x32xf32> -> vector<16x32xf32>
    %c16_31 = arith.constant 16 : index
    %c32_32 = arith.constant 32 : index
    %27 = vector.load %arg8[%c16_31, %c32_32] : memref<32x224xf32, #tpu.memory_space<vmem>>, vector<16x32xf32>
    tpu.vector_store %arg8[%c16_31, %c32_32], %26 {strides = array<i32>} : memref<32x224xf32, #tpu.memory_space<vmem>>, vector<16x32xf32>,
    %cst_33 = arith.constant dense<0.000000e+00> : vector<16x32xf32>
    %28 = tpu.matmul %25, %26, %cst_33 {dimension_numbers = #tpu.dot_dimension_numbers<[1], [0], [0], [1], [0, 0, 1, 1], [], []>} : vector<16x16xf32>, vector<16x32xf32>, vector<16x32xf32> -> vector<16x32xf32>
    %c16_34 = arith.constant 16 : index
    %c64_35 = arith.constant 64 : index
    %29 = vector.load %arg8[%c16_34, %c64_35] : memref<32x224xf32, #tpu.memory_space<vmem>>, vector<16x32xf32>
    tpu.vector_store %arg8[%c16_34, %c64_35], %28 {strides = array<i32>} : memref<32x224xf32, #tpu.memory_space<vmem>>, vector<16x32xf32>,
    %c1_36 = arith.constant 1 : index
    %c0_37 = arith.constant 0 : index
    %c0_38 = arith.constant 0 : index
    %30 = vector.load %arg3[%c1_36, %c0_37, %c0_38] : memref<2x16x16xf32, #tpu.memory_space<vmem>>, vector<1x16x16xf32>
    %31 = vector.shape_cast %30 : vector<1x16x16xf32> to vector<16x16xf32>
    %cst_39 = arith.constant dense<0.000000e+00> : vector<16x32xf32>
    %32 = tpu.matmul %31, %22, %cst_39 {dimension_numbers = #tpu.dot_dimension_numbers<[1], [0], [0], [1], [0, 0, 1, 1], [], []>} : vector<16x16xf32>, vector<16x32xf32>, vector<16x32xf32> -> vector<16x32xf32>
    %c16_40 = arith.constant 16 : index
    %c96_41 = arith.constant 96 : index
    %33 = vector.load %arg8[%c16_40, %c96_41] : memref<32x224xf32, #tpu.memory_space<vmem>>, vector<16x32xf32>
    tpu.vector_store %arg8[%c16_40, %c96_41], %32 {strides = array<i32>} : memref<32x224xf32, #tpu.memory_space<vmem>>, vector<16x32xf32>,
    %cst_42 = arith.constant dense<0.000000e+00> : vector<16x32xf32>
    %34 = tpu.matmul %31, %32, %cst_42 {dimension_numbers = #tpu.dot_dimension_numbers<[1], [0], [0], [1], [0, 0, 1, 1], [], []>} : vector<16x16xf32>, vector<16x32xf32>, vector<16x32xf32> -> vector<16x32xf32>
    %c16_43 = arith.constant 16 : index
    %c128_44 = arith.constant 128 : index
    %35 = vector.load %arg8[%c16_43, %c128_44] : memref<32x224xf32, #tpu.memory_space<vmem>>, vector<16x32xf32>
    tpu.vector_store %arg8[%c16_43, %c128_44], %34 {strides = array<i32>} : memref<32x224xf32, #tpu.memory_space<vmem>>, vector<16x32xf32>,
    %c1_45 = arith.constant 1 : index
    %c0_46 = arith.constant 0 : index
    %c0_47 = arith.constant 0 : index
    %36 = vector.load %arg4[%c1_45, %c0_46, %c0_47] : memref<2x16x16xf32, #tpu.memory_space<vmem>>, vector<1x16x16xf32>
    %37 = vector.shape_cast %36 : vector<1x16x16xf32> to vector<16x16xf32>
    %cst_48 = arith.constant dense<0.000000e+00> : vector<16x32xf32>
    %38 = tpu.matmul %37, %22, %cst_48 {dimension_numbers = #tpu.dot_dimension_numbers<[1], [0], [0], [1], [0, 0, 1, 1], [], []>} : vector<16x16xf32>, vector<16x32xf32>, vector<16x32xf32> -> vector<16x32xf32>
    %c16_49 = arith.constant 16 : index
    %c160_50 = arith.constant 160 : index
    %39 = vector.load %arg8[%c16_49, %c160_50] : memref<32x224xf32, #tpu.memory_space<vmem>>, vector<16x32xf32>
    tpu.vector_store %arg8[%c16_49, %c160_50], %38 {strides = array<i32>} : memref<32x224xf32, #tpu.memory_space<vmem>>, vector<16x32xf32>,
    %cst_51 = arith.constant dense<0.000000e+00> : vector<16x32xf32>
    %40 = tpu.matmul %37, %38, %cst_51 {dimension_numbers = #tpu.dot_dimension_numbers<[1], [0], [0], [1], [0, 0, 1, 1], [], []>} : vector<16x16xf32>, vector<16x32xf32>, vector<16x32xf32> -> vector<16x32xf32>
    %c16_52 = arith.constant 16 : index
    %c192_53 = arith.constant 192 : index
    %41 = vector.load %arg8[%c16_52, %c192_53] : memref<32x224xf32, #tpu.memory_space<vmem>>, vector<16x32xf32>
    tpu.vector_store %arg8[%c16_52, %c192_53], %40 {strides = array<i32>} : memref<32x224xf32, #tpu.memory_space<vmem>>, vector<16x32xf32>,
    %c0_54 = arith.constant 0 : index
    %c0_55 = arith.constant 0 : index
    %42 = vector.load %arg8[%c0_54, %c0_55] : memref<32x224xf32, #tpu.memory_space<vmem>>, vector<32x224xf32>
    %c0_56 = arith.constant 0 : index
    %c0_57 = arith.constant 0 : index
    %43 = vector.load %arg5[%c0_56, %c0_57] : memref<224x64xf32, #tpu.memory_space<vmem>>, vector<224x64xf32>
    %cst_58 = arith.constant dense<0.000000e+00> : vector<32x64xf32>
    %44 = tpu.matmul %42, %43, %cst_58 {dimension_numbers = #tpu.dot_dimension_numbers<[1], [0], [0], [1], [0, 0, 1, 1], [], []>} : vector<32x224xf32>, vector<224x64xf32>, vector<32x64xf32> -> vector<32x64xf32>
    %c0_59 = arith.constant 0 : index
    %c0_60 = arith.constant 0 : index
    %45 = vector.load %arg6[%c0_59, %c0_60] : memref<1x64xf32, #tpu.memory_space<vmem>>, vector<1x64xf32>
    %46 = vector.broadcast %45 : vector<1x64xf32> to vector<32x64xf32>
    %47 = arith.addf %44, %46 : vector<32x64xf32>
    %c0_61 = arith.constant 0 : index
    %c0_62 = arith.constant 0 : index
    %48 = vector.load %arg7[%c0_61, %c0_62] : memref<32x64xf32, #tpu.memory_space<vmem>>, vector<32x64xf32>
    tpu.vector_store %arg7[%c0_61, %c0_62], %47 {strides = array<i32>} : memref<32x64xf32, #tpu.memory_space<vmem>>, vector<32x64xf32>,
    return
  }
  func.func @transform_0(%arg0: i32) -> (i32, i32, i32) {
    %c0_i32 = arith.constant 0 : i32
    %c0_i32_0 = arith.constant 0 : i32
    %c0_i32_1 = arith.constant 0 : i32
    return %arg0, %c0_i32, %c0_i32_0 : i32, i32, i32
  }
  func.func @transform_1(%arg0: i32) -> (i32, i32, i32) {
    %c0_i32 = arith.constant 0 : i32
    %c0_i32_0 = arith.constant 0 : i32
    %c0_i32_1 = arith.constant 0 : i32
    return %arg0, %c0_i32, %c0_i32_0 : i32, i32, i32
  }
  func.func @transform_2(%arg0: i32) -> (i32, i32, i32) {
    %c0_i32 = arith.constant 0 : i32
    %c0_i32_0 = arith.constant 0 : i32
    %c0_i32_1 = arith.constant 0 : i32
    return %arg0, %c0_i32, %c0_i32_0 : i32, i32, i32
  }
  func.func @transform_3(%arg0: i32) -> (i32, i32, i32) {
    %c0_i32 = arith.constant 0 : i32
    %c0_i32_0 = arith.constant 0 : i32
    %c0_i32_1 = arith.constant 0 : i32
    return %arg0, %c0_i32, %c0_i32_0 : i32, i32, i32
  }
  func.func @transform_4(%arg0: i32) -> (i32, i32) {
    %c0_i32 = arith.constant 0 : i32
    %c0_i32_0 = arith.constant 0 : i32
    %c0_i32_1 = arith.constant 0 : i32
    return %c0_i32, %c0_i32_0 : i32, i32
  }
  func.func @transform_5(%arg0: i32) -> (i32, i32) {
    %c0_i32 = arith.constant 0 : i32
    %c0_i32_0 = arith.constant 0 : i32
    %c0_i32_1 = arith.constant 0 : i32
    return %c0_i32, %c0_i32_0 : i32, i32
  }
  func.func @transform_6(%arg0: i32) -> (i32, i32) {
    %c0_i32 = arith.constant 0 : i32
    %c0_i32_0 = arith.constant 0 : i32
    return %arg0, %c0_i32 : i32, i32
  }
}

</mosaic_0001>

<bundles_post_ra>
// kernel: batch_a_gcn_forward.1
= control target key start
LH: loop header
LB: loop body
LE: loop exit
PB: predicated region body
PF: predicated region fallthrough
CT: control target
= control target key end

     0   :  { %vm30_vm0 = vcmask 130048   ;;  %vm25_vm1 = vcmask 261120   ;;  %v1473_v28 = vmov 0.0   ;;  %vm120_vm2 = vcmask 523520   ;;  %s1474_s22 = smov 64   ;;  %s1852_s0 = inlined_call_operand.vmem [shape: f32[2,16,32], index: 0, kind: input, shape index: {}]   ;;  %s1853_s1 = inlined_call_operand.vmem [shape: f32[2,16,16], index: 1, kind: input, shape index: {}]   ;;  %s1854_s2 = inlined_call_operand.vmem [shape: f32[2,16,16], index: 2, kind: input, shape index: {}]   ;;  %s1855_s3 = inlined_call_operand.vmem [shape: f32[2,16,16], index: 3, kind: input, shape index: {}]   ;;  %s1856_s4 = inlined_call_operand.vmem [shape: f32[224,64], index: 4, kind: input, shape index: {}]   ;;  %s1857_s5 = inlined_call_operand.vmem [shape: f32[1,64], index: 5, kind: input, shape index: {}]   ;;  %s1858_s6 = inlined_call_operand.vmem [shape: f32[32,64], index: 6, kind: output, shape index: {}]  }
   0x1   :  { %v24_v0 = vld [vmem:[%s1852_s0 + $0x8] sm:$0xff]  ;;  %v23_v1 = vld [vmem:[%s1852_s0] sm:$0xff]  ;;  %v1255_v8 = vld [vmem:[%s1852_s0 + $0x18] sm:$0xff]  ;;  %vm206_vm3 = vcmask 785920   ;;  %vm300_vm4 = vcmask 1048320   ;;  %vm1135_vm5 = vcmask 785408  }
   0x2   :  { %v28_v2 = vld [vmem:[%s1853_s1] sm:$0xff]  ;;  %1327 = vmatprep.subr.mxu0 %v24_v0  ;;  %v1523_v3 = vld [vmem:[%s1853_s1 + $0x8] sm:$0xff]  ;;  %v1560_v9 = vld [vmem:[%s1853_s1 + $0x10] sm:$0xff]  ;;  %27 = vst.msk [vmem:[#allocation2 + $0x10] sm:$0xff] %vm25_vm1, %v24_v0  ;;  %vm1233_vm6 = vcmask 523264  }
   0x3   :  { %1331 = vmatprep.mubr.msk.f32.mxu0 %vm30_vm0, %v28_v2  ;;  %1328 = vmatpush3.msra.mxu0 %v24_v0  ;;  %v1529_v4 = vld [vmem:[%s1854_s2] sm:$0xff]  ;;  %v1538_v5 = vld [vmem:[%s1854_s2 + $0x8] sm:$0xff]  ;;  %v1254_v10 = vld [vmem:[%s1852_s0 + $0x10] sm:$0xff]  ;;  %26 = vst.msk [vmem:[#allocation2] sm:$0xff] %vm25_vm1, %v23_v1 }
   0x4   :  { %1338 = vmatprep.mubr.msk.f32.mxu1 %vm30_vm0, %v28_v2  ;;  %1329 = vmatprep.subr.mxu0 %v23_v1  ;;  %v1543_v6 = vld [vmem:[%s1855_s3] sm:$0xff]  ;;  %v1552_v7 = vld [vmem:[%s1855_s3 + $0x8] sm:$0xff]  ;;  %v1572_v11 = vld [vmem:[%s1853_s1 + $0x18] sm:$0xff]  ;;  %561 = vst.msk [vmem:[#allocation2 + $0x20] sm:$0xff] %vm25_vm1, %v1254_v10 }
   0x5   :  { %1330 = vmatpush3.msra.mxu0 %v23_v1  ;;  %v1577_v12 = vld [vmem:[%s1854_s2 + $0x10] sm:$0xff]  ;;  %v1586_v13 = vld [vmem:[%s1854_s2 + $0x18] sm:$0xff]  ;;  %562 = vst.msk [vmem:[#allocation2 + $0x30] sm:$0xff] %vm25_vm1, %v1255_v8  ;;  %s1471_s2 = smov 32   ;;  %v1113_v31 = vld [vmem:[%s1856_s4 + $0x68] sm:$0xff] }
   0x6   :  { %1332 = vmatmul.mubr.msk.f32.vlgmr.msra.gmra.mxu0 %vm30_vm0, %v1523_v3  ;;  %1341 = vmatprep.subr.mxu0 %v24_v0  ;;  %v1591_v14 = vld [vmem:[%s1855_s3 + $0x10] sm:$0xff]  ;;  %v1600_v15 = vld [vmem:[%s1855_s3 + $0x18] sm:$0xff]  ;;  %s1472_s3 = smov 96   ;;  %v1112_v32 = vld [vmem:[%s1856_s4 + $0x60] sm:$0xff] }
   0x7   :  { %1342 = vmatpush3.msra.mxu0 %v24_v0  ;;  %1345 = vmatprep.mubr.msk.f32.mxu0 %vm30_vm0, %v1529_v4  ;;  %v1115_v29 = vld [vmem:[%s1856_s4 + $0x78] sm:$0xff]  ;;  %v1114_v30 = vld [vmem:[%s1856_s4 + $0x70] sm:$0xff]  ;;  %v1109_v35 = vld [vmem:[%s1856_s4 + $0x48] sm:$0xff] }
   0x8   :  { %1343 = vmatprep.subr.mxu0 %v23_v1  ;;  %v1111_v33 = vld [vmem:[%s1856_s4 + $0x58] sm:$0xff]  ;;  %v1110_v34 = vld [vmem:[%s1856_s4 + $0x50] sm:$0xff]  ;;  %v1108_v37 = vld [vmem:[%s1856_s4 + $0x40] sm:$0xff] }
   0x9   :  { %1344 = vmatpush3.msra.mxu0 %v23_v1  ;;  %v1107_v38 = vld [vmem:[%s1856_s4 + $0x38] sm:$0xff]  ;;  %v1106_v40 = vld [vmem:[%s1856_s4 + $0x30] sm:$0xff]  ;;  %v1105_v41 = vld [vmem:[%s1856_s4 + $0x28] sm:$0xff] }
   0xa   :  { %1346 = vmatmul.mubr.msk.f32.vlgmr.msra.gmra.mxu0 %vm30_vm0, %v1538_v5  ;;  %1355 = vmatprep.subr.mxu0 %v24_v0  ;;  %v1104_v43 = vld [vmem:[%s1856_s4 + $0x20] sm:$0xff]  ;;  %v1103_v44 = vld [vmem:[%s1856_s4 + $0x18] sm:$0xff]  ;;  %v1102_v47 = vld [vmem:[%s1856_s4 + $0x10] sm:$0xff] }
   0xb   :  { %1356 = vmatpush3.msra.mxu0 %v24_v0  ;;  %1359 = vmatprep.mubr.msk.f32.mxu0 %vm30_vm0, %v1543_v6  ;;  %v1101_v48 = vld [vmem:[%s1856_s4 + $0x8] sm:$0xff]  ;;  %v1100_v50 = vld [vmem:[%s1856_s4] sm:$0xff]  ;;  %v1127_v52 = vld [vmem:[%s1856_s4 + $0xd8] sm:$0xff] }
   0xc   :  { %1357 = vmatprep.subr.mxu0 %v23_v1  ;;  %v1126_v53 = vld [vmem:[%s1856_s4 + $0xd0] sm:$0xff]  ;;  %v1125_v54 = vld [vmem:[%s1856_s4 + $0xc8] sm:$0xff]  ;;  %v1124_v55 = vld [vmem:[%s1856_s4 + $0xc0] sm:$0xff] }
   0xd   :  { %1358 = vmatpush3.msra.mxu0 %v23_v1  ;;  %v1123_v56 = vld [vmem:[%s1856_s4 + $0xb8] sm:$0xff]  ;;  %v1122_v57 = vld [vmem:[%s1856_s4 + $0xb0] sm:$0xff]  ;;  %v1121_v58 = vld [vmem:[%s1856_s4 + $0xa8] sm:$0xff] }
   0xe   :  { %1360 = vmatmul.mubr.msk.f32.vlgmr.msra.gmra.mxu0 %vm30_vm0, %v1552_v7  ;;  %1369 = vmatprep.subr.mxu0 %v1255_v8  ;;  %v1120_v60 = vld [vmem:[%s1856_s4 + $0xa0] sm:$0xff]  ;;  %v1119_v62 = vld [vmem:[%s1856_s4 + $0x98] sm:$0xff]  ;;  %v1118_v0 = vld [vmem:[%s1856_s4 + $0x90] sm:$0xff] }
   0xf   :  { %1370 = vmatpush3.msra.mxu0 %v1255_v8  ;;  %1373 = vmatprep.mubr.msk.f32.mxu0 %vm30_vm0, %v1560_v9  ;;  %v1117_v2 = vld [vmem:[%s1856_s4 + $0x88] sm:$0xff] }
  0x10   :  { %1371 = vmatprep.subr.mxu0 %v1254_v10 }
  0x11   :  { %1372 = vmatpush3.msra.mxu0 %v1254_v10 }
  0x12   :  { %1374 = vmatmul.mubr.msk.f32.vlgmr.msra.gmra.mxu0 %vm30_vm0, %v1572_v11  ;;  %1383 = vmatprep.subr.mxu0 %v1255_v8 }
  0x13   :  { %1384 = vmatpush3.msra.mxu0 %v1255_v8  ;;  %1387 = vmatprep.mubr.msk.f32.mxu0 %vm30_vm0, %v1577_v12 }
  0x14   :  { %1385 = vmatprep.subr.mxu0 %v1254_v10 }
  0x15   :  { %1386 = vmatpush3.msra.mxu0 %v1254_v10 }
  0x16   :  { %1388 = vmatmul.mubr.msk.f32.vlgmr.msra.gmra.mxu0 %vm30_vm0, %v1586_v13  ;;  %1397 = vmatprep.subr.mxu0 %v1255_v8 }
  0x17   :  { %1398 = vmatpush3.msra.mxu0 %v1255_v8  ;;  %1401 = vmatprep.mubr.msk.f32.mxu0 %vm30_vm0, %v1591_v14 }
  0x18   :  { %1399 = vmatprep.subr.mxu0 %v1254_v10 }
  0x19   :  { %1400 = vmatpush3.msra.mxu0 %v1254_v10 }
  0x1a   :  { %1402 = vmatmul.mubr.msk.f32.vlgmr.msra.gmra.mxu0 %vm30_vm0, %v1600_v15  ;;  %1148 = vmatprep.subr.mxu0 %v1473_v28 }
  0x1b   :  { %1149 = vmatpush1.msra.mxu0 %v1115_v29 }
  0x1c   :  { %1150 = vmatprep.subr.mxu0 %v1473_v28 }
  0x1d   :  { %1151 = vmatpush1.msra.mxu0 %v1114_v30 }
  0x1e   :  { %1152 = vmatprep.subr.mxu0 %v1473_v28 }
  0x1f   :  { %1153 = vmatpush1.msra.mxu0 %v1113_v31 }
  0x20   :  { %1154 = vmatprep.subr.mxu0 %v1473_v28 }
  0x21   :  { %1155 = vmatpush1.msra.mxu0 %v1112_v32 }
  0x22   :  { %1156 = vmatprep.subr.mxu0 %v1473_v28 }
  0x23   :  { %1157 = vmatpush1.msra.mxu0 %v1111_v33 }
  0x24   :  { %1158 = vmatprep.subr.mxu0 %v1473_v28 }
  0x25   :  { %1159 = vmatpush1.msra.mxu0 %v1110_v34 }
  0x26   :  { %1160 = vmatprep.subr.mxu0 %v1473_v28 }
  0x27   :  { %1161 = vmatpush1.msra.mxu0 %v1109_v35 }
  0x28   :  { %1162 = vmatprep.subr.mxu0 %v1473_v28 }
  0x29   :  { %1163 = vmatpush1.msra.mxu0 %v1108_v37 }
  0x2a   :  { %1164 = vmatprep.subr.mxu0 %v1473_v28 }
  0x2b   :  { %1165 = vmatpush1.msra.mxu0 %v1107_v38 }
  0x2c   :  { %1166 = vmatprep.subr.mxu0 %v1473_v28 }
  0x2d   :  { %1167 = vmatpush1.msra.mxu0 %v1106_v40 }
  0x2e   :  { %1168 = vmatprep.subr.mxu0 %v1473_v28 }
  0x2f   :  { %1169 = vmatpush1.msra.mxu0 %v1105_v41 }
  0x30   :  { %1170 = vmatprep.subr.mxu0 %v1473_v28 }
  0x31   :  { %1171 = vmatpush1.msra.mxu0 %v1104_v43 }
  0x32   :  { %1172 = vmatprep.subr.mxu0 %v1473_v28 }
  0x33   :  { %1173 = vmatpush1.msra.mxu0 %v1103_v44 }
  0x34   :  { %1174 = vmatprep.subr.mxu0 %v1473_v28 }
  0x35   :  { %1175 = vmatpush1.msra.mxu0 %v1102_v47 }
  0x36   :  { %1176 = vmatprep.subr.mxu0 %v1473_v28 }
  0x37   :  { %1177 = vmatpush1.msra.mxu0 %v1101_v48 }
  0x38   :  { %1178 = vmatprep.subr.mxu0 %v1473_v28 }
  0x39   :  { %1179 = vmatpush1.msra.mxu0 %v1100_v50 }
  0x3a   :  { %1188 = vmatprep.subr.mxu0 %v1473_v28 }
  0x3b   :  { %1189 = vmatpush2.msra.mxu0 %v1127_v52 }
  0x3c   :  { %1190 = vmatprep.subr.mxu0 %v1473_v28 }
  0x3d   :  { %1191 = vmatpush2.msra.mxu0 %v1126_v53 }
  0x3e   :  { %1192 = vmatprep.subr.mxu0 %v1473_v28 }
  0x3f   :  { %1193 = vmatpush2.msra.mxu0 %v1125_v54 }
  0x40   :  { %1194 = vmatprep.subr.mxu0 %v1473_v28 }
  0x41   :  { %1195 = vmatpush2.msra.mxu0 %v1124_v55 }
  0x42   :  { %1196 = vmatprep.subr.mxu0 %v1473_v28 }
  0x43   :  { %1197 = vmatpush2.msra.mxu0 %v1123_v56 }
  0x44   :  { %1198 = vmatprep.subr.mxu0 %v1473_v28 }
  0x45   :  { %1199 = vmatpush2.msra.mxu0 %v1122_v57 }
  0x46   :  { %1200 = vmatprep.subr.mxu0 %v1473_v28 }
  0x47   :  { %1201 = vmatpush2.msra.mxu0 %v1121_v58 }
  0x48   :  { %1202 = vmatprep.subr.mxu0 %v1473_v28 }
  0x49   :  { %1203 = vmatpush2.msra.mxu0 %v1120_v60 }
  0x4a   :  { %1204 = vmatprep.subr.mxu0 %v1473_v28 }
  0x4b   :  { %1205 = vmatpush2.msra.mxu0 %v1119_v62 }
  0x4c   :  { %1206 = vmatprep.subr.mxu0 %v1473_v28 }
  0x4d   :  { %1207 = vmatpush2.msra.mxu0 %v1118_v0 }
  0x4e   :  { %1208 = vmatprep.subr.mxu0 %v1473_v28 }
  0x4f   :  { %1209 = vmatpush2.msra.mxu0 %v1117_v2 }
  0x50   :  { %1210 = vmatprep.subr.mxu0 %v1473_v28 }
  0xc6   :  { %v1333_v16 = vpop.f32.mrf.mxu0 }
  0xc7   :  { %116 = vrot.lane.b32.xlu0 %v1333_v16, %s1471_s2  ;;  %1334 = vmatprep.subr.mxu1 %v1333_v16 }
  0xc8   :  { %v103_v17 = vpop.f32.mrf.mxu0  ;;  %1335 = vmatpush3.msra.mxu1 %v1333_v16 }
  0xc9   :  { %1336 = vmatprep.subr.mxu1 %v103_v17 }
  0xca   :  { %1337 = vmatpush3.msra.mxu1 %v103_v17  ;;  %v1609_v18 = vpop.f32.mrf.mxu0 }
  0xcb   :  { %114 = vrot.lane.b32.xlu0 %v103_v17, %s1471_s2  ;;  %1339 = vmatmul.mubr.msk.f32.vlgmr.msra.gmra.mxu1 %vm30_vm0, %v1523_v3  ;;  %v1116_v3 = vld [vmem:[%s1856_s4 + $0x80] sm:$0xff] }
  0xcc   :  { %1348 = vmatprep.subr.mxu1 %v1609_v18  ;;  %v283_v19 = vpop.f32.mrf.mxu0  ;;  %1352 = vmatprep.mubr.msk.f32.mxu1 %vm30_vm0, %v1529_v4 }
  0xcd   :  { %1349 = vmatpush3.msra.mxu1 %v1609_v18  ;;  %1211 = vmatpush2.msra.mxu0 %v1116_v3 }
  0xce   :  { %1350 = vmatprep.subr.mxu1 %v283_v19  ;;  %v1361_v20 = vpop.f32.mrf.mxu0 }
  0xcf   :  { %1351 = vmatpush3.msra.mxu1 %v283_v19  ;;  %294 = vrot.lane.b32.xlu0 %v283_v19, %s1472_s3 }
  0xd0   :  { %467 = vrot.lane.b32.xlu1 %v1361_v20, %s1471_s2  ;;  %1353 = vmatmul.mubr.msk.f32.vlgmr.msra.gmra.mxu1 %vm30_vm0, %v1538_v5  ;;  %v454_v21 = vpop.f32.mrf.mxu0 }
  0xd1   :  { %1362 = vmatprep.subr.mxu1 %v1361_v20  ;;  %1366 = vmatprep.mubr.msk.f32.mxu1 %vm30_vm0, %v1543_v6 }
  0xd2   :  { %1363 = vmatpush3.msra.mxu1 %v1361_v20  ;;  %v1375_v22 = vpop.f32.mrf.mxu0 }
  0xd3   :  { %1364 = vmatprep.subr.mxu1 %v454_v21  ;;  %465 = vrot.lane.b32.xlu0 %v454_v21, %s1471_s2 }
  0xd4   :  { %1365 = vmatpush3.msra.mxu1 %v454_v21  ;;  %v638_v23 = vpop.f32.mrf.mxu0 }
  0xd5   :  { %1367 = vmatmul.mubr.msk.f32.vlgmr.msra.gmra.mxu1 %vm30_vm0, %v1552_v7  ;;  %1376 = vmatprep.subr.mxu1 %v1375_v22 }
  0xd6   :  { %1377 = vmatpush3.msra.mxu1 %v1375_v22  ;;  %649 = vrot.lane.b32.xlu1 %v638_v23, %s1471_s2  ;;  %v1628_v24 = vpop.f32.mrf.mxu0 }
  0xd7   :  { %1378 = vmatprep.subr.mxu1 %v638_v23  ;;  %1380 = vmatprep.mubr.msk.f32.mxu1 %vm30_vm0, %v1560_v9 }
  0xd8   :  { %1379 = vmatpush3.msra.mxu1 %v638_v23  ;;  %651 = vrot.lane.b32.xlu0 %v1375_v22, %s1471_s2  ;;  %v817_v25 = vpop.f32.mrf.mxu0 }
  0xd9   :  { %1381 = vmatmul.mubr.msk.f32.vlgmr.msra.gmra.mxu1 %vm30_vm0, %v1572_v11  ;;  %1390 = vmatprep.subr.mxu1 %v1628_v24 }
  0xda   :  { %1391 = vmatpush3.msra.mxu1 %v1628_v24  ;;  %828 = vrot.lane.b32.xlu1 %v817_v25, %s1472_s3  ;;  %v1403_v26 = vpop.f32.mrf.mxu0 }
  0xdb   :  { %1392 = vmatprep.subr.mxu1 %v817_v25  ;;  %1394 = vmatprep.mubr.msk.f32.mxu1 %vm30_vm0, %v1577_v12 }
  0xdc   :  { %1393 = vmatpush3.msra.mxu1 %v817_v25  ;;  %v988_v27 = vpop.f32.mrf.mxu0 }
  0xdd   :  { %1395 = vmatmul.mubr.msk.f32.vlgmr.msra.gmra.mxu1 %vm30_vm0, %v1586_v13  ;;  %1404 = vmatprep.subr.mxu1 %v1403_v26 }
  0xde   :  { %1405 = vmatpush3.msra.mxu1 %v1403_v26  ;;  %1001 = vrot.lane.b32.xlu1 %v1403_v26, %s1471_s2 }
  0xdf   :  { %1406 = vmatprep.subr.mxu1 %v988_v27  ;;  %1408 = vmatprep.mubr.msk.f32.mxu1 %vm30_vm0, %v1591_v14 }
  0xe0   :  { %1407 = vmatpush3.msra.mxu1 %v988_v27 }
  0xe1   :  { %1409 = vmatmul.mubr.msk.f32.vlgmr.msra.gmra.mxu1 %vm30_vm0, %v1600_v15  ;;  %1411 = vmatprep.subr.mxu1 %v1473_v28 }
  0xe2   :  { %999 = vrot.lane.b32.xlu1 %v988_v27, %s1471_s2  ;;  %1439 = vmatpush1.msra.mxu1 %v1115_v29 }
  0xe3   :  { %1412 = vmatprep.subr.mxu1 %v1473_v28 }
  0xe4   :  { %1440 = vmatpush1.msra.mxu1 %v1114_v30 }
  0xe5   :  { %1413 = vmatprep.subr.mxu1 %v1473_v28 }
  0xe6   :  { %1441 = vmatpush1.msra.mxu1 %v1113_v31 }
  0xe7   :  { %1414 = vmatprep.subr.mxu1 %v1473_v28 }
  0xe8   :  { %1442 = vmatpush1.msra.mxu1 %v1112_v32 }
  0xe9   :  { %1415 = vmatprep.subr.mxu1 %v1473_v28 }
  0xea   :  { %1443 = vmatpush1.msra.mxu1 %v1111_v33  ;;  %v1274_v33 = vld [vmem:[%s1857_s5] ss:$0 sm:$0xff] }
  0xeb   :  { %1416 = vmatprep.subr.mxu1 %v1473_v28 }
  0xec   :  { %1444 = vmatpush1.msra.mxu1 %v1110_v34 }
  0xed   :  { %1417 = vmatprep.subr.mxu1 %v1473_v28 }
  0xee   :  { %1445 = vmatpush1.msra.mxu1 %v1109_v35 }
  0xef   :  { %1418 = vmatprep.subr.mxu1 %v1473_v28 }
  0xf0   :  { %1446 = vmatpush1.msra.mxu1 %v1108_v37 }
  0xf1   :  { %1419 = vmatprep.subr.mxu1 %v1473_v28 }
  0xf2   :  { %1447 = vmatpush1.msra.mxu1 %v1107_v38 }
  0xf3   :  { %1420 = vmatprep.subr.mxu1 %v1473_v28 }
  0xf4   :  { %1448 = vmatpush1.msra.mxu1 %v1106_v40 }
  0xf5   :  { %1421 = vmatprep.subr.mxu1 %v1473_v28 }
  0xf6   :  { %1449 = vmatpush1.msra.mxu1 %v1105_v41 }
  0xf7   :  { %1422 = vmatprep.subr.mxu1 %v1473_v28 }
  0xf8   :  { %1450 = vmatpush1.msra.mxu1 %v1104_v43 }
  0xf9   :  { %1423 = vmatprep.subr.mxu1 %v1473_v28 }
  0xfa   :  { %1451 = vmatpush1.msra.mxu1 %v1103_v44 }
  0xfb   :  { %1424 = vmatprep.subr.mxu1 %v1473_v28 }
  0xfc   :  { %1452 = vmatpush1.msra.mxu1 %v1102_v47 }
  0xfd   :  { %1425 = vmatprep.subr.mxu1 %v1473_v28 }
  0xfe   :  { %1453 = vmatpush1.msra.mxu1 %v1101_v48 }
  0xff   :  { %1426 = vmatprep.subr.mxu1 %v1473_v28 }
 0x100   :  { %1454 = vmatpush1.msra.mxu1 %v1100_v50 }
 0x101   :  { %1427 = vmatprep.subr.mxu1 %v1473_v28 }
 0x102   :  { %1455 = vmatpush2.msra.mxu1 %v1127_v52 }
 0x103   :  { %1428 = vmatprep.subr.mxu1 %v1473_v28 }
 0x104   :  { %1456 = vmatpush2.msra.mxu1 %v1126_v53 }
 0x105   :  { %1429 = vmatprep.subr.mxu1 %v1473_v28 }
 0x106   :  { %1457 = vmatpush2.msra.mxu1 %v1125_v54 }
 0x107   :  { %1430 = vmatprep.subr.mxu1 %v1473_v28 }
 0x108   :  { %1458 = vmatpush2.msra.mxu1 %v1124_v55 }
 0x109   :  { %1431 = vmatprep.subr.mxu1 %v1473_v28 }
 0x10a   :  { %1459 = vmatpush2.msra.mxu1 %v1123_v56 }
 0x10b   :  { %1432 = vmatprep.subr.mxu1 %v1473_v28 }
 0x10c   :  { %1460 = vmatpush2.msra.mxu1 %v1122_v57 }
 0x10d   :  { %1433 = vmatprep.subr.mxu1 %v1473_v28 }
 0x10e   :  { %1461 = vmatpush2.msra.mxu1 %v1121_v58 }
 0x10f   :  { %1434 = vmatprep.subr.mxu1 %v1473_v28 }
 0x110   :  { %1462 = vmatpush2.msra.mxu1 %v1120_v60 }
 0x111   :  { %1435 = vmatprep.subr.mxu1 %v1473_v28 }
 0x112   :  { %1463 = vmatpush2.msra.mxu1 %v1119_v62 }
 0x113   :  { %1436 = vmatprep.subr.mxu1 %v1473_v28 }
 0x114   :  { %1464 = vmatpush2.msra.mxu1 %v1118_v0 }
 0x115   :  { %1437 = vmatprep.subr.mxu1 %v1473_v28 }
 0x116   :  { %1465 = vmatpush2.msra.mxu1 %v1117_v2 }
 0x117   :  { %1438 = vmatprep.subr.mxu1 %v1473_v28 }
 0x118   :  { %1466 = vmatpush2.msra.mxu1 %v1116_v3 }
 0x139   :  { %v117_v36 = vpop.permute.xlu0 %116 }
 0x13a   :  { %122 = vst.msk [vmem:[#allocation2 + $0x10] sm:$0xff] %vm120_vm2, %v117_v36 }
 0x13d   :  { %v115_v39 = vpop.permute.xlu0 %114 }
 0x13e   :  { %121 = vst.msk [vmem:[#allocation2] sm:$0xff] %vm120_vm2, %v115_v39 }
 0x141   :  { %v1703_v42 = vpop.permute.xlu0 %294 }
 0x142   :  { %v1715_v45 = vpop.permute.xlu1 %467 }
 0x145   :  { %v1717_v46 = vpop.permute.xlu0 %465 }
 0x148   :  { %v650_v49 = vpop.permute.xlu1 %649 }
 0x149   :  { %655 = vst.msk [vmem:[#allocation2 + $0x20] sm:$0xff] %vm120_vm2, %v650_v49 }
 0x14a   :  { %v652_v51 = vpop.permute.xlu0 %651 }
 0x14b   :  { %656 = vst.msk [vmem:[#allocation2 + $0x30] sm:$0xff] %vm120_vm2, %v652_v51 }
 0x14c   :  { %v829_v4 = vpop.permute.xlu1 %828 }
 0x150   :  { %v1002_v8 = vpop.permute.xlu1 %1001 }
 0x154   :  { %v1000_v12 = vpop.permute.xlu1 %999 }
 0x18b   :  { %v1340_v59 = vpop.f32.mrf.mxu1 }
 0x18c   :  { %202 = vrot.lane.b32.xlu0 %v1340_v59, %s1474_s22 }
 0x18d   :  { %v189_v61 = vpop.f32.mrf.mxu1 }
 0x190   :  { %v1354_v63 = vpop.f32.mrf.mxu1  ;;  %200 = vrot.lane.b32.xlu0 %v189_v61, %s1474_s22 }
 0x191   :  { %379 = vst.msk [vmem:[#allocation2 + $0x18] sm:$0xff] %vm25_vm1, %v1354_v63 }
 0x192   :  { %472 = vst.msk [vmem:[#allocation2 + $0x18] sm:$0xff] %vm120_vm2, %v1715_v45  ;;  %v369_v1 = vpop.f32.mrf.mxu1 }
 0x193   :  { %378 = vst.msk [vmem:[#allocation2 + $0x8] sm:$0xff] %vm25_vm1, %v369_v1 }
 0x194   :  { %471 = vst.msk [vmem:[#allocation2 + $0x8] sm:$0xff] %vm120_vm2, %v1717_v46 }
 0x195   :  { %v1368_v5 = vpop.f32.mrf.mxu1 }
 0x196   :  { %552 = vrot.lane.b32.xlu1 %v1368_v5, %s1474_s22 }
 0x197   :  { %v539_v6 = vpop.f32.mrf.mxu1 }
 0x199   :  { %v1382_v7 = vpop.f32.mrf.mxu1 }
 0x19a   :  { %550 = vrot.lane.b32.xlu1 %v539_v6, %s1474_s22 }
 0x19b   :  { %v723_v9 = vpop.f32.mrf.mxu1 }
 0x19c   :  { %734 = vrot.lane.b32.xlu0 %v723_v9, %s1474_s22 }
 0x19d   :  { %v1396_v10 = vpop.f32.mrf.mxu1 }
 0x19e   :  { %912 = vst.msk [vmem:[#allocation2 + $0x38] sm:$0xff] %vm25_vm1, %v1396_v10 }
 0x19f   :  { %1006 = vst.msk [vmem:[#allocation2 + $0x38] sm:$0xff] %vm120_vm2, %v1002_v8  ;;  %v902_v11 = vpop.f32.mrf.mxu1 }
 0x1a0   :  { %911 = vst.msk [vmem:[#allocation2 + $0x28] sm:$0xff] %vm25_vm1, %v902_v11  ;;  %736 = vrot.lane.b32.xlu0 %v1382_v7, %s1474_s22 }
 0x1a1   :  { %1005 = vst.msk [vmem:[#allocation2 + $0x28] sm:$0xff] %vm120_vm2, %v1000_v12  ;;  %v1410_v13 = vpop.f32.mrf.mxu1 }
 0x1a3   :  { %v1073_v14 = vpop.f32.mrf.mxu1 }
 0x1a4   :  { %296 = vrot.lane.b32.xlu0 %v1609_v18, %s1472_s3  ;;  %1084 = vrot.lane.b32.xlu1 %v1073_v14, %s1474_s22 }
 0x1a8   :  { %1086 = vrot.lane.b32.xlu1 %v1410_v13, %s1474_s22 }
 0x1ac   :  { %830 = vrot.lane.b32.xlu1 %v1628_v24, %s1472_s3 }
 0x1fe   :  { %v203_v15 = vpop.permute.xlu0 %202 }
 0x1ff   :  { %208 = vst.msk [vmem:[#allocation2 + $0x10] sm:$0xff] %vm206_vm3, %v203_v15 }
 0x202   :  { %v201_v16 = vpop.permute.xlu0 %200 }
 0x203   :  { %207 = vst.msk [vmem:[#allocation2] sm:$0xff] %vm206_vm3, %v201_v16 }
 0x204   :  { %301 = vst.msk [vmem:[#allocation2] sm:$0xff] %vm300_vm4, %v1703_v42 }
 0x208   :  { %v553_v17 = vpop.permute.xlu1 %552 }
 0x209   :  { %557 = vst.msk [vmem:[#allocation2 + $0x18] sm:$0xff] %vm206_vm3, %v553_v17 }
 0x20b   :  { %v1092_v22 = vld [vmem:[#allocation2] sm:$0xff] }
 0x20c   :  { %v551_v18 = vpop.permute.xlu1 %550 }
 0x20d   :  { %556 = vst.msk [vmem:[#allocation2 + $0x8] sm:$0xff] %vm206_vm3, %v551_v18 }
 0x20e   :  { %v735_v19 = vpop.permute.xlu0 %734 }
 0x20f   :  { %740 = vst.msk [vmem:[#allocation2 + $0x20] sm:$0xff] %vm206_vm3, %v735_v19 }
 0x210   :  { %834 = vst.msk [vmem:[#allocation2 + $0x20] sm:$0xff] %vm300_vm4, %v829_v4  ;;  %v1095_v25 = vld [vmem:[#allocation2 + $0x18] sm:$0xff] }
 0x212   :  { %v737_v20 = vpop.permute.xlu0 %736 }
 0x213   :  { %741 = vst.msk [vmem:[#allocation2 + $0x30] sm:$0xff] %vm206_vm3, %v737_v20 }
 0x214   :  { %v1093_v21 = vld [vmem:[#allocation2 + $0x8] sm:$0xff] }
 0x215   :  { %1275 = vmatprep.mubr.msk.f32.mxu0 %vm1135_vm5, %v1093_v21 }
 0x216   :  { %v297_v23 = vpop.permute.xlu0 %296  ;;  %v1085_v24 = vpop.permute.xlu1 %1084  ;;  %1213 = vmatmul.mubr.f32.vlgmr.msra.gmra.mxu0 %v1092_v22 }
 0x217   :  { %302 = vst.msk [vmem:[#allocation2 + $0x10] sm:$0xff] %vm300_vm4, %v297_v23  ;;  %1276 = vmatprep.mubr.msk.f32.mxu0 %vm1135_vm5, %v1095_v25  ;;  %v1096_v30 = vld [vmem:[#allocation2 + $0x20] sm:$0xff] }
 0x218   :  { %1090 = vst.msk [vmem:[#allocation2 + $0x28] sm:$0xff] %vm206_vm3, %v1085_v24 }
 0x21a   :  { %v1087_v26 = vpop.permute.xlu1 %1086 }
 0x21b   :  { %1091 = vst.msk [vmem:[#allocation2 + $0x38] sm:$0xff] %vm206_vm3, %v1087_v26 }
 0x21e   :  { %v831_v27 = vpop.permute.xlu1 %830  ;;  %v1094_v28 = vld [vmem:[#allocation2 + $0x10] sm:$0xff] }
 0x21f   :  { %v1097_v29 = vld [vmem:[#allocation2 + $0x28] sm:$0xff]  ;;  %835 = vst.msk [vmem:[#allocation2 + $0x30] sm:$0xff] %vm300_vm4, %v831_v27  ;;  %1218 = vmatmul.mubr.f32.gmra.mxu0 %v1094_v28 }
 0x220   :  { %1277 = vmatprep.mubr.msk.f32.mxu1 %vm1135_vm5, %v1097_v29 }
 0x221   :  { %1223 = vmatmul.mubr.f32.vlgmr.msra.gmra.mxu1 %v1096_v30 }
 0x222   :  { %v1099_v31 = vld [vmem:[#allocation2 + $0x38] sm:$0xff] }
 0x223   :  { %1278 = vmatprep.mubr.msk.f32.mxu1 %vm1135_vm5, %v1099_v31 }
 0x226   :  { %v1098_v32 = vld [vmem:[#allocation2 + $0x30] sm:$0xff] }
 0x227   :  { %1228 = vmatmul.mubr.f32.gmra.mxu1 %v1098_v32 }
 0x2d6   :  { %v1214_v34 = vpop.f32.mrf.mxu0 }
 0x2d7   :  { %v1215_v35 = vadd.f32 %v1274_v33, %v1214_v34 }
 0x2d8   :  { %v1216_v36 = vpop.f32.mrf.mxu0 }
 0x2d9   :  { %1234 = vst.msk [vmem:[%s1858_s6] sm:$0xff] %vm1233_vm6, %v1215_v35 }
 0x2df   :  { %v1219_v37 = vpop.f32.mrf.mxu0 }
 0x2e0   :  { %v1220_v38 = vadd.f32 %v1274_v33, %v1219_v37 }
 0x2e1   :  { %v1224_v39 = vpop.f32.mrf.mxu1  ;;  %v1221_v41 = vpop.f32.mrf.mxu0 }
 0x2e2   :  { %v1225_v40 = vadd.f32 %v1274_v33, %v1224_v39  ;;  %1235 = vst.msk [vmem:[%s1858_s6 + $0x8] sm:$0xff] %vm1233_vm6, %v1220_v38 }
 0x2e3   :  { %v1226_v42 = vpop.f32.mrf.mxu1 }
 0x2e4   :  { %1236 = vst.msk [vmem:[%s1858_s6 + $0x10] sm:$0xff] %vm1233_vm6, %v1225_v40 }
 0x2e7   :  { %v1229_v43 = vpop.f32.mrf.mxu1 }
 0x2e8   :  { %v1230_v44 = vadd.f32 %v1274_v33, %v1229_v43 }
 0x2e9   :  { %v1231_v45 = vpop.f32.mrf.mxu1 }
 0x2ea   :  { %1237 = vst.msk [vmem:[%s1858_s6 + $0x18] sm:$0xff] %vm1233_vm6, %v1230_v44 }

</bundles_post_ra>
